<compile_context>
chip_gen: v7x
topology: tpu7x:2x2x1
jax: 0.10.0
libtpu: 0.0.40
codegen_flags: <defaults>
</compile_context>

<pallas_src>
import functools

import jax
import jax.numpy as jnp
from jax.experimental import pallas as pl
from jax.experimental.pallas import tpu as pltpu


def _round_up(x, m):
    return (x + m - 1) // m * m


def _pick_spatial_tile(hw, chans, max_bytes, max_lanes=4096):
    """Multiple-of-128 lane tile with chans*tile*4B <= max_bytes (>=128 lanes),
    never wider than HW rounded up to 128, capped to bound in-kernel unrolling."""
    hw_pad = _round_up(hw, 128)
    lanes = (max_bytes // (4 * chans)) // 128 * 128
    lanes = max(128, min(lanes, max_lanes))
    return min(hw_pad, lanes)


def _vmem_limit(*buffer_bytes, headroom=16 << 20, cap=48 << 20):
    """Explicit scoped-VMEM request: actual footprint + headroom, capped below v7x's
    64 MiB physical VMEM (also fine on v5e/v6e with 128 MiB)."""
    return int(min(cap, sum(buffer_bytes) + headroom))


def _pool_conv_kernel(x_ref, w_ref, y_ref, acc_ref, *,
                      hw, ts, steps_per_split, need_mask, inv_hw):
    """Partial global-average-pool fused with the 1x1-conv weight contraction.

    grid = (N, SPLITS, steps_per_split); the innermost ("arbitrary") axis walks the
    spatial tiles of this split.  acc_ref (Cin, 128) collects per-channel partial sums
    with pure VPU adds that hide under the input DMA; the finalize does one
    (Cout, Cin) @ (Cin, 128) dot + lane reduce per (batch, split).
    """
    s = pl.program_id(2)

    @pl.when(s == 0)
    def _():
        acc_ref[...] = jnp.zeros_like(acc_ref)

    x = x_ref[0]                                             # (Cin, ts) spatial tile
    if need_mask:
        # Global spatial position of every lane; zero out the ragged tail and any
        # duplicated (index-clamped) tiles so the sum stays exact.
        tile_idx = pl.program_id(1) * steps_per_split + s
        pos = tile_idx * ts + jax.lax.broadcasted_iota(jnp.int32, x.shape, 1)
        x = jnp.where(pos < hw, x, 0.0)

    # Fold the ts-wide tile into the 128-lane accumulator: unrolled static slices + vadd
    # only (no per-step cross-lane reduce, no masked narrow stores).
    acc = acc_ref[...]
    for j in range(ts // 128):
        acc = acc + x[:, j * 128:(j + 1) * 128]
    acc_ref[...] = acc

    @pl.when(s == pl.num_programs(2) - 1)
    def _():
        # Once per (batch, split): (Cout, Cin) @ (Cin, 128) -> (Cout, 128), then a single
        # cross-lane reduce -> (Cout, 1).  Result is naturally Cout-on-sublanes, so the
        # broadcast kernel needs no relayout.  HIGHEST precision keeps f32 accuracy.
        m = jnp.dot(w_ref[...], acc_ref[...],
                    preferred_element_type=jnp.float32,
                    precision=jax.lax.Precision.HIGHEST)
        y_ref[...] = (jnp.sum(m, axis=1, keepdims=True) * inv_hw)[None, None]


def _broadcast_kernel(y_ref, b_ref, o_ref):
    """Combine per-split conv partials, add bias once, and broadcast along the spatial
    lanes (bilinear upsample from a 1x1 source with align_corners=True is a constant)."""
    splits = y_ref.shape[1]
    y = y_ref[0, 0]                                          # (Cout, 1)
    for p in range(1, splits):
        y = y + y_ref[0, p]
    y = y + b_ref[...]                                       # (Cout, 1)
    o_ref[...] = jnp.broadcast_to(y[None], o_ref.shape)      # lane-dense (1, Cout, ts)


def aspp_pooling_forward(x_nchw, params, *, spatial_splits=2, tile_bytes=4 * 1024 * 1024):
    """Forward pass of ASPP_pooling. x_nchw: (N, Cin, H, W) f32 -> (N, Cout, H, W)."""
    w, b = params["conv_w"], params["conv_b"]
    N, Cin, H, W = x_nchw.shape
    Cout = w.shape[0]
    HW = H * W

    x = x_nchw.reshape(N, Cin, HW).astype(jnp.float32)       # free reshape, stays NCHW
    w_oc = w.reshape(Cout, Cin).astype(jnp.float32)          # (Cout, Cin)
    b_col = b.reshape(Cout, 1).astype(jnp.float32)           # (Cout, 1)

    # ---- kernel 1: global average pool + 1x1-conv weight (accumulate-then-finalize) ---
    ts1 = _pick_spatial_tile(HW, Cin, tile_bytes)
    n_tiles = pl.cdiv(HW, ts1)
    splits = spatial_splits if n_tiles >= 2 else 1            # megacore split (v7x)
    steps = pl.cdiv(n_tiles, splits)
    need_mask = (HW % ts1 != 0) or (steps * splits != n_tiles)

    def x_index(n, p, s):
        # Clamp so tiles past the end (only when n_tiles % splits != 0) re-read the last
        # valid tile; their contribution is masked to zero inside the kernel.
        return (n, 0, jnp.minimum(p * steps + s, n_tiles - 1))

    vmem1 = _vmem_limit(2 * Cin * ts1 * 4,                    # double-buffered input tiles
                        2 * Cout * Cin * 4,                   # resident conv weight
                        _round_up(Cin, 8) * 128 * 4)          # accumulator scratch
    partial = pl.pallas_call(
        functools.partial(_pool_conv_kernel, hw=HW, ts=ts1, steps_per_split=steps,
                          need_mask=need_mask, inv_hw=1.0 / HW),
        out_shape=jax.ShapeDtypeStruct((N, splits, Cout, 1), jnp.float32),
        grid=(N, splits, steps),
        in_specs=[
            pl.BlockSpec((1, Cin, ts1), x_index),                 # pipelined input tiles
            pl.BlockSpec((Cout, Cin), lambda n, p, s: (0, 0)),    # conv weight (resident)
        ],
        out_specs=pl.BlockSpec((1, 1, Cout, 1), lambda n, p, s: (n, p, 0, 0)),
        scratch_shapes=[pltpu.VMEM((Cin, 128), jnp.float32)],
        compiler_params=pltpu.CompilerParams(
            dimension_semantics=("parallel", "parallel", "arbitrary"),
            vmem_limit_bytes=vmem1),
    )(x, w_oc)                                                # (N, splits, Cout, 1)

    # ---- kernel 2: combine splits + bias + broadcast to (H, W), lane-dense NCHW tiles -
    ts2 = _pick_spatial_tile(HW, Cout, tile_bytes)
    vmem2 = _vmem_limit(2 * Cout * ts2 * 4,
                        2 * splits * _round_up(Cout, 8) * 4,
                        _round_up(Cout, 8) * 4)
    out = pl.pallas_call(
        _broadcast_kernel,
        out_shape=jax.ShapeDtypeStruct((N, Cout, HW), jnp.float32),
        grid=(N, pl.cdiv(HW, ts2)),
        in_specs=[
            pl.BlockSpec((1, splits, Cout, 1), lambda n, s: (n, 0, 0, 0)),
            pl.BlockSpec((Cout, 1), lambda n, s: (0, 0)),
        ],
        out_specs=pl.BlockSpec((1, Cout, ts2), lambda n, s: (n, 0, s)),
        compiler_params=pltpu.CompilerParams(
            dimension_semantics=("parallel", "parallel"),
            vmem_limit_bytes=vmem2),
    )(partial, b_col)                                         # (N, Cout, HW)

    return out.reshape(N, Cout, H, W)


def init_params(key, input_channel, out_channel):
    """Deterministic synthetic params matching nn.Conv2d(input_channel, out_channel, 1)."""
    k1, k2 = jax.random.split(key)
    scale = 1.0 / input_channel ** 0.5
    conv_w = jax.random.uniform(k1, (out_channel, input_channel, 1, 1), jnp.float32,
                                -scale, scale)
    conv_b = jax.random.uniform(k2, (out_channel,), jnp.float32, -scale, scale)
    return dict(conv_w=conv_w, conv_b=conv_b)


def _reference(x, params):
    """Pure-JAX reference: mean -> 1x1 conv -> constant broadcast."""
    N, Cin, H, W = x.shape
    Cout = params["conv_w"].shape[0]
    pooled = jnp.mean(x, axis=(2, 3))                         # (N, Cin)
    wmat = params["conv_w"].reshape(Cout, Cin)
    y = jnp.einsum("nc,oc->no", pooled, wmat,
                   precision=jax.lax.Precision.HIGHEST) + params["conv_b"]
    return jnp.broadcast_to(y[:, :, None, None], (N, Cout, H, W))


if __name__ == "__main__":
    key = jax.random.PRNGKey(0)
    kx, kp, kx2, kp2 = jax.random.split(key, 4)

    # -- main case: small, 128-divisible spatial size --------------------------------
    N, Cin, H, W = 2, 4, 16, 16
    Cout = 8
    x = jax.random.normal(kx, (N, Cin, H, W), jnp.float32)
    params = init_params(kp, Cin, Cout)

    out = jax.block_until_ready(aspp_pooling_forward(x, params))
    assert out.shape == (N, Cout, H, W), out.shape
    assert bool(jnp.all(jnp.isfinite(out)))
    assert bool(jnp.allclose(out, _reference(x, params), atol=1e-5, rtol=1e-5))

    # -- ragged case: HW % 128 != 0 and odd tile count (exercises masking, the megacore
    #    split, and the clamped duplicate tile) --------------------------------------
    N2, Cin2, H2, W2, Cout2 = 1, 5, 15, 20, 3
    x2 = jax.random.normal(kx2, (N2, Cin2, H2, W2), jnp.float32)
    params2 = init_params(kp2, Cin2, Cout2)
    out2 = jax.block_until_ready(
        aspp_pooling_forward(x2, params2, tile_bytes=1))      # force 128-lane tiles
    assert out2.shape == (N2, Cout2, H2, W2), out2.shape
    assert bool(jnp.allclose(out2, _reference(x2, params2), atol=1e-5, rtol=1e-5))

    print("KERNEL_OK")
</pallas_src>

<mosaic_0001>
module attributes {stable_mosaic.version = 11 : i64} {
  func.func @_pool_conv_kernel(%arg0: i32, %arg1: i32, %arg2: i32, %arg3: memref<1x4x256xf32, #tpu.memory_space<vmem>>, %arg4: memref<8x4xf32, #tpu.memory_space<vmem>>, %arg5: memref<1x1x8x1xf32, #tpu.memory_space<vmem>>, %arg6: memref<4x128xf32, #tpu.memory_space<vmem>>) attributes {dimension_semantics = [#tpu.dimension_semantics<parallel>, #tpu.dimension_semantics<parallel>, #tpu.dimension_semantics<arbitrary>], iteration_bounds = array<i64: 2, 1, 1>, scalar_prefetch = 0 : i64, scratch_operands = 1 : i64, tpu.core_type = #tpu.core_type<tc>, window_params = [{transform_indices = @transform_0, window_bounds = array<i64: 1, 4, 256>}, {pipeline_mode = #tpu.pipeline_mode<synchronous>, transform_indices = @transform_1, window_bounds = array<i64: 8, 4>}, {transform_indices = @transform_2, window_bounds = array<i64: 1, 1, 8, 1>}]} {
    %c0_i32 = arith.constant 0 : i32
    %0 = arith.cmpi eq, %arg2, %c0_i32 : i32
    %1 = arith.extui %0 : i1 to i32
    %c0_i32_0 = arith.constant 0 : i32
    %2 = arith.cmpi ne, %1, %c0_i32_0 : i32
    scf.if %2 {
      %cst = arith.constant 0.000000e+00 : f32
      %14 = vector.broadcast %cst : f32 to vector<4x128xf32>
      %c0_9 = arith.constant 0 : index
      %c0_10 = arith.constant 0 : index
      %15 = vector.load %arg6[%c0_9, %c0_10] : memref<4x128xf32, #tpu.memory_space<vmem>>, vector<4x128xf32>
      tpu.vector_store %arg6[%c0_9, %c0_10], %14 {strides = array<i32>} : memref<4x128xf32, #tpu.memory_space<vmem>>, vector<4x128xf32>,
    } else {
    }
    %c0 = arith.constant 0 : index
    %c0_1 = arith.constant 0 : index
    %c0_2 = arith.constant 0 : index
    %3 = vector.load %arg3[%c0, %c0_1, %c0_2] : memref<1x4x256xf32, #tpu.memory_space<vmem>>, vector<1x4x256xf32>
    %4 = vector.shape_cast %3 : vector<1x4x256xf32> to vector<4x256xf32>
    %c0_3 = arith.constant 0 : index
    %c0_4 = arith.constant 0 : index
    %5 = vector.load %arg6[%c0_3, %c0_4] : memref<4x128xf32, #tpu.memory_space<vmem>>, vector<4x128xf32>
    %6 = vector.extract_strided_slice %4 {offsets = [0, 0], sizes = [4, 128], strides = [1, 1]} : vector<4x256xf32> to vector<4x128xf32>
    %7 = arith.addf %5, %6 : vector<4x128xf32>
    %8 = vector.extract_strided_slice %4 {offsets = [0, 128], sizes = [4, 128], strides = [1, 1]} : vector<4x256xf32> to vector<4x128xf32>
    %9 = arith.addf %7, %8 : vector<4x128xf32>
    %c0_5 = arith.constant 0 : index
    %c0_6 = arith.constant 0 : index
    %10 = vector.load %arg6[%c0_5, %c0_6] : memref<4x128xf32, #tpu.memory_space<vmem>>, vector<4x128xf32>
    tpu.vector_store %arg6[%c0_5, %c0_6], %9 {strides = array<i32>} : memref<4x128xf32, #tpu.memory_space<vmem>>, vector<4x128xf32>,
    %c0_i32_7 = arith.constant 0 : i32
    %11 = arith.cmpi eq, %arg2, %c0_i32_7 : i32
    %12 = arith.extui %11 : i1 to i32
    %c0_i32_8 = arith.constant 0 : i32
    %13 = arith.cmpi ne, %12, %c0_i32_8 : i32
    scf.if %13 {
      %c0_9 = arith.constant 0 : index
      %c0_10 = arith.constant 0 : index
      %14 = vector.load %arg4[%c0_9, %c0_10] : memref<8x4xf32, #tpu.memory_space<vmem>>, vector<8x4xf32>
      %c0_11 = arith.constant 0 : index
      %c0_12 = arith.constant 0 : index
      %15 = vector.load %arg6[%c0_11, %c0_12] : memref<4x128xf32, #tpu.memory_space<vmem>>, vector<4x128xf32>
      %cst = arith.constant dense<0.000000e+00> : vector<8x128xf32>
      %16 = tpu.matmul %14, %15, %cst {dimension_numbers = #tpu.dot_dimension_numbers<[1], [0], [0], [1], [0, 0, 1, 1], [], []>, precision = #tpu.contract_precision<fp32>} : vector<8x4xf32>, vector<4x128xf32>, vector<8x128xf32> -> vector<8x128xf32>
      %cst_13 = arith.constant dense<0.000000e+00> : vector<8xf32>
      %17 = vector.multi_reduction <add>, %16, %cst_13 [1] : vector<8x128xf32> to vector<8xf32>
      %18 = vector.shape_cast %17 : vector<8xf32> to vector<8x1xf32>
      %cst_14 = arith.constant 3.906250e-03 : f32
      %19 = vector.broadcast %cst_14 : f32 to vector<8x1xf32>
      %20 = arith.mulf %18, %19 : vector<8x1xf32>
      %21 = vector.shape_cast %20 : vector<8x1xf32> to vector<1x1x8x1xf32>
      %c0_15 = arith.constant 0 : index
      %c0_16 = arith.constant 0 : index
      %c0_17 = arith.constant 0 : index
      %c0_18 = arith.constant 0 : index
      %22 = vector.load %arg5[%c0_15, %c0_16, %c0_17, %c0_18] : memref<1x1x8x1xf32, #tpu.memory_space<vmem>>, vector<1x1x8x1xf32>
      tpu.vector_store %arg5[%c0_15, %c0_16, %c0_17, %c0_18], %21 {strides = array<i32>} : memref<1x1x8x1xf32, #tpu.memory_space<vmem>>, vector<1x1x8x1xf32>,
    } else {
    }
    return
  }
  func.func @transform_0(%arg0: i32, %arg1: i32, %arg2: i32) -> (i32, i32, i32) {
    %c1_i32 = arith.constant 1 : i32
    %0 = arith.muli %arg1, %c1_i32 : i32
    %1 = arith.addi %0, %arg2 : i32
    %c0_i32 = arith.constant 0 : i32
    %2 = arith.minsi %1, %c0_i32 : i32
    %c0_i32_0 = arith.constant 0 : i32
    %c0_i32_1 = arith.constant 0 : i32
    return %arg0, %c0_i32_0, %2 : i32, i32, i32
  }
  func.func @transform_1(%arg0: i32, %arg1: i32, %arg2: i32) -> (i32, i32) {
    %c0_i32 = arith.constant 0 : i32
    %c0_i32_0 = arith.constant 0 : i32
    %c0_i32_1 = arith.constant 0 : i32
    return %c0_i32, %c0_i32_0 : i32, i32
  }
  func.func @transform_2(%arg0: i32, %arg1: i32, %arg2: i32) -> (i32, i32, i32, i32) {
    %c0_i32 = arith.constant 0 : i32
    %c0_i32_0 = arith.constant 0 : i32
    %c0_i32_1 = arith.constant 0 : i32
    return %arg0, %arg1, %c0_i32, %c0_i32_0 : i32, i32, i32, i32
  }
}

</mosaic_0001>

<bundles_post_ra>
// kernel: tpu_custom_call.1
= control target key start
LH: loop header
LB: loop body
LE: loop exit
PB: predicated region body
PF: predicated region fallthrough
CT: control target
= control target key end

     0   :  { %7 = vsyncpa [#allocation4], 0  ;;  %s1126_s0 = inlined_call_operand.hbm [shape: f32[2,4,256], index: 0, kind: input, shape index: {}]   ;;  %s1127_s1 = inlined_call_operand.vmem [shape: f32[8,4], index: 1, kind: input, shape index: {}]   ;;  %s1128_s2 = inlined_call_operand.vmem [shape: f32[2,1,8,1], index: 2, kind: output, shape index: {}]  }
   0x1   :  { %9 = vsyncpa [#allocation4 + $0x1], 0  ;;  %s992_s9 = smov 0   ;;  %s994_s10 = smov 0  }
   0x2   :  { %s996_s11 = smov 0   ;;  %s998_s12 = smov 0  }
   0x3   :  { %s1000_s13 = smov 0   ;;  %s1002_s14 = smov 0  }
   0x4 LB: > { %s770_s15 = sadd.s32 4294967295, %s972_s14   ;;  %s34_s16 = sadd.s32 1, %s968_s13  ;;  %s972_s14 = sphi %s1002_s14, %s15_s14   ;;  %s968_s13 = sphi %s1000_s13, %s1138_s13   ;;  %s964_s12 = sphi %s998_s12, %s1137_s12   ;;  %s960_s11 = sphi %s996_s11, %s1136_s11   ;;  %s956_s10 = sphi %s994_s10, %s1135_s10   ;;  %s952_s9 = sphi %s992_s9, %s1134_s9  }
   0x5   : > { %p36_p0 = scmp.ge.s32.totalorder %s34_s16, 2  ;;  %s49_s17 = sadd.s32 1, %s960_s11 }
   0x6   : > { %p56_p1 = scmp.ne.s32.totalorder %s960_s11, %s956_s10  ;;  %p57_p2 = scmp.eq.s32.totalorder %s972_s14, 0 }
   0x7   : > { %s1140_s16 = smov (%p36_p0, %s34_s16), 0  ;;  %p62_p4 = scmp.ne.s32.totalorder %s956_s10, %s952_s9 }
   0x8   : > { %p1028_p3 = por %p57_p2, %p56_p1  ;;  %s44_s19 = ssub.s32 %s968_s13, %s1140_s16 }
   0x9   : > { %p63_p5 = scmp.eq.s32.totalorder %s770_s15, 0  ;;  %p47_p6 = scmp.eq.s32.totalorder %s44_s19, 0 }
   0xa   : > { %p840_p8 = scmp.lt.s32.totalorder %s972_s14, 2  ;;  %s138_s22 = sand.u32 1, %s960_s11  }
   0xb   : > { %p1035_p7 = por %p63_p5, %p62_p4  ;;  %s782_s23 = sshll.u32 %s968_s13, 7 }
   0xc   : > { %s1041_s21 = scalar_select %p47_p6, %s960_s11, %s49_s17  }
   0xd   : > { %s774_s24 = sshll.u32 %s138_s22, 3  ;;  %s1048_s27 = scalar_lea.hbm %s1126_s0, %s782_s23 }
   0xe   : > { %s142_s28 = scalar_lea.vmem [#allocation3], %s774_s24  ;;  %p1052_p9 = pnand %p840_p8, %p1028_p3 }
   0xf   : > { %s155_s29 = sshll.u32 %s142_s28, 4  ;;  %s139_s3 = scalar_lea.sflag [#allocation4], %s138_s22  ;;  %s1056_s29 = int_to_ptr.vmem [resolvable:$true] %s155_s29 }
  0x10   : > { %s892_s4 = scalar_lea.hbm %s1048_s27, 128  ;;  %p894_p13 = pneg %p1052_p9 }
  0x11   : > { %p893_p12 = scmp.ne.s32.totalorder %s1048_s27, %s892_s4  ;;  %s897_s7 = scalar_lea.hbm %s1126_s0, 256 }
  0x12   : > { %p898_p2 = scmp.lt.u32.totalorder %s1048_s27, %s1126_s0  ;;  %p899_p3 = scmp.lt.u32.totalorder %s897_s7, %s892_s4 }
  0x13   : > { %p895_p0 = pnand %p894_p13, %p893_p12  ;;  %p901_p5 = scmp.lt.u32.totalorder %s892_s4, %s1048_s27 }
  0x14   : > { %p900_p4 = por %p899_p3, %p898_p2 }
  0x15   : > { %p896_p1 = pneg %p895_p0 }
  0x16   : > { %p902_p6 = por %p901_p5, %p900_p4 }
  0x18   : > { %p903_p8 = pnand %p902_p6, %p896_p1 }
  0x1a   : > { %906 = shalt.err (!%p903_p8)
}
  0x1b   : > { %s907_s15 = scalar_lea.vmem %s1056_s29, 128  ;;  %s974_s17 = smov [#allocation3]  }
  0x1c   : > { %p908_p12 = scmp.ne.s32.totalorder %s1056_s29, %s907_s15  ;;  %s912_s18 = sshll.u32 %s974_s17, 4  ;;  %s913_s18 = int_to_ptr.vmem [resolvable:$false] %s912_s18 }
  0x1d   : > { %s914_s19 = scalar_lea.vmem %s913_s18, 256  ;;  %p915_p11 = scmp.lt.s32.totalorder %s1056_s29, %s913_s18 }
  0x1e   : > { %p910_p0 = pnand %p908_p12, %p894_p13  ;;  %p916_p2 = scmp.lt.s32.totalorder %s914_s19, %s907_s15 }
  0x20   : > { %p911_p10 = pneg %p910_p0  ;;  %p917_p3 = por %p916_p2, %p915_p11 }
  0x22   : > { %p918_p4 = pnand %p917_p3, %p911_p10 }
  0x24   : > { %921 = shalt.err (!%p918_p4)
}
  0x25   : > { %839 = dma.hbm_to_vmem [thread:$0]  (!%p1052_p9), %s1048_s27, 128, %s1056_s29, %s139_s3  }
  0x26   : > { %p1132_p1 = scmp.lt.s32.totalorder %s972_s14, 3  ;;  %p1133_p5 = scmp.ge.s32.totalorder %s972_s14, 1 }
  0x28   : > { %p161_p13 = pnand %p1133_p5, %p1132_p1 }
  0x29   : > { %s166_s22 = sand.u32 (!%p161_p13), 1, %s956_s10  }
  0x2a   : > { %164 = sbr.rel (%p161_p13) target bundleno = 450 (0x1c2), region = 28  ;;  %s778_s23 = sshll.u32 (!%p161_p13), %s166_s22, 3 }
  0x2b   : > { %s167_s24 = scalar_lea.sflag (!%p161_p13), [#allocation4], %s166_s22  ;;  %s170_s25 = scalar_lea.vmem (!%p161_p13), [#allocation3], %s778_s23 }
  0x31   : > { %947 = dma.done.wait (%p1035_p7), %s167_s24, 128  }
  0x32   : > { %949 = vsyncadd (%p1035_p7), %s167_s24, 4294967168  ;;  %v975_v0 = vmov 0.0   ;;  %vm976_vm0 = vmmov 0   ;;  %vm222_vm1 = vcmask 31744   ;;  %v209_v1 = vld [vmem:[%s170_s25] sm:$0xff]  ;;  %vm226_vm2 = vcmask 1043456  }
  0x33   : > { %208 = vst [vmem:[#allocation2] sm:$0xf] %v975_v0  ;;  %795 = vmatprep.subr.mxu1 %v975_v0  ;;  %810 = vmatprep.subr.mxu0 %v975_v0  ;;  %v220_v2 = vld [vmem:[%s1127_s1] sm:$0xff]  ;;  %v213_v4 = vcombine.high %v209_v1, %v209_v1  ;;  %p197_p7 = scmp.lt.s32.totalorder %s964_s12, 1  ;;  %vm679_vm3 = vcmask 7168  }
  0x34   : > { %797 = vmatprep.mubr.msk.f32.mxu1 %vm976_vm0, %v975_v0  ;;  %812 = vmatprep.mubr.msk.f32.mxu0 %vm976_vm0, %v975_v0  ;;  %v224_v5 = vsel %vm222_vm1, %v220_v2, 0 }
  0x35   : > { %v296_v7 = vand.u32 4294901760, %v224_v5  ;;  %s1142_s12 = smov (!%p197_p7, %s964_s12), 1 }
  0x36   : > { %s779_s20 = sshll.u32 %s1142_s12, 3 }
  0x37   : > { %v297_v9 = vsub.f32 %v224_v5, %v296_v7  ;;  %s203_s30 = scalar_lea.vmem %s1128_s2, %s779_s20 }
  0x39   : > { %v298_v10 = vand.u32 4294901760, %v297_v9 }
  0x3a   : > { %v210_v3 = vld [vmem:[#allocation2] sm:$0xf] }
  0x3b   : > { %v211_v6 = vadd.f32 %v210_v3, %v209_v1  ;;  %v299_v11 = vsub.f32 %v297_v9, %v298_v10 }
  0x3d   : > { %v215_v8 = vadd.f32 %v213_v4, %v211_v6  ;;  %v300_v14 = vand.u32 4294901760, %v299_v11 }
  0x3f   : > { %216 = vst [vmem:[#allocation2] sm:$0xf] %v215_v8 }
  0x46   : > { %v221_v12 = vld [vmem:[#allocation2] sm:$0xf] }
  0x47   : > { %v228_v13 = vsel %vm226_vm2, %v221_v12, 0 }
  0x48   : > { %v231_v15 = vand.u32 4294901760, %v228_v13 }
  0x4a   : > { %796 = vmatpush3.msra.mxu1 %v231_v15  ;;  %v308_v16 = vsub.f32 %v228_v13, %v231_v15  ;;  %811 = vmatpush3.msra.mxu0 %v231_v15 }
  0x4b   : > { %798 = vmatmul.mubr.f32.vlgmr.msra.gmra.mrb[0].mxu1 %v300_v14  ;;  %813 = vmatmul.mubr.f32.vlgmr.msra.gmra.mrb[0].mxu0 %v298_v10 }
  0x4c   : > { %800 = vmatprep.subr.mxu1 %v975_v0  ;;  %815 = vmatprep.subr.mxu0 %v975_v0  ;;  %v309_v17 = vand.u32 4294901760, %v308_v16 }
  0x4d   : > { %802 = vmatprep.mubr.msk.f32.mxu1 %vm976_vm0, %v975_v0  ;;  %817 = vmatprep.mubr.msk.f32.mxu0 %vm976_vm0, %v975_v0 }
  0x4e   : > { %v310_v18 = vsub.f32 %v308_v16, %v309_v17  ;;  %816 = vmatpush3.msra.mxu0 %v309_v17 }
  0x4f   : > { %820 = vmatprep.subr.mxu0 %v975_v0 }
  0x50   : > { %v311_v19 = vand.u32 4294901760, %v310_v18 }
  0x52   : > { %801 = vmatpush3.msra.mxu1 %v311_v19 }
  0x53   : > { %803 = vmatmul.mubr.f32.vlgmr.msra.gmra.mrb[0].mxu1 %v296_v7  ;;  %818 = vmatmul.mubr.f32.vlgmr.msra.gmra.mrb[0].mxu0 %v296_v7 }
  0x54   : > { %805 = vmatprep.subr.mxu1 %v975_v0  ;;  %807 = vmatprep.mubr.msk.f32.mxu1 %vm976_vm0, %v975_v0 }
  0x55   : > { %806 = vmatpush3.msra.mxu1 %v308_v16  ;;  %821 = vmatpush3.msra.mxu0 %v231_v15 }
  0x56   : > { %822 = vmatprep.mubr.msk.f32.mxu0 %vm976_vm0, %v975_v0 }
  0x5b   : > { %808 = vmatmul.mubr.f32.vlgmr.msra.gmra.mrb[0].mxu1 %v297_v9  ;;  %823 = vmatmul.mubr.f32.vlgmr.msra.gmra.mrb[0].mxu0 %v296_v7 }
 0x12e   : > { %v452_v20 = vpop.f32.mrb[0].mxu1  ;;  %v672_v21 = vpop.f32.mrb[0].mxu0 }
 0x12f   : > { %v809_v22 = vpop.f32.mrb[1].mxu1  ;;  %v824_v23 = vpop.f32.mrb[1].mxu0  ;;  %v825_v24 = vadd.f32 %v672_v21, %v452_v20 }
 0x131   : > { %676 = vadd.xlane.f32.xlu0 %v825_v24 }
 0x1be   : > { %v677_v25 = vpop.xlane.xlu0 %676 }
 0x1bf   : > { %v678_v26 = vmul.f32 0.00390625, %v677_v25 }
 0x1c1   : > { %680 = vst.msk [vmem:[%s203_s30] sm:$0xff] %vm679_vm3, %v678_v26 }
 0x1c2 PF: > { %s15_s14 = sadd.s32 1, %s972_s14   ;;  %s1134_s9 = smov %s956_s10 }
 0x1c3   : > { %p12_p9 = scmp.ge.s32.totalorder %s15_s14, 4   ;;  %s1135_s10 = smov %s960_s11 }
 0x1c4   : > { %s1136_s11 = smov %s1041_s21  ;;  %s1137_s12 = smov %s968_s13 }
 0x1c5   : > { %s1138_s13 = smov %s1140_s16  ;;  %14 = sbr.rel (!%p12_p9) target bundleno = 4 (0x4), region = 76 }
 0x1cc   :  { %706 = vsyncpa [#allocation4], 1 }
 0x1cd   :  { %708 = vsyncpa [#allocation4 + $0x1], 1 }

</bundles_post_ra>
